<compile_context>
chip_gen: v7x
topology: tpu7x:2x2x1
jax: 0.10.0
libtpu: 0.0.40
codegen_flags: <defaults>
</compile_context>

<pallas_src>
import functools

import jax
import jax.numpy as jnp
from jax.experimental import pallas as pl
from jax.experimental.pallas import tpu as pltpu


def _round_up(n, m):
    return (n + m - 1) // m * m


def _block_spec(shape, index_map, buffer_count=None):
    """BlockSpec with optional explicit buffer depth (graceful fallback if unsupported)."""
    if buffer_count is None:
        return pl.BlockSpec(shape, index_map)
    try:
        return pl.BlockSpec(shape, index_map, pipeline_mode=pl.Buffered(buffer_count))
    except TypeError:  # older jax without pipeline_mode on BlockSpec
        return pl.BlockSpec(shape, index_map)


def _vmem_capacity_bytes():
    try:
        return int(pltpu.get_tpu_info().vmem_capacity_bytes)
    except Exception:
        return 64 * 1024 * 1024  # conservative fallback (v7x per-TC size)


def _highway_kernel(x_ref, w_ref, b_ref, o_ref, *, ns, eps, f_real, fp, needs_mask):
    x = x_ref[...]                                               # (tm, Fp), native dtype
    x_mxu = x if x.dtype == w_ref.dtype else x.astype(w_ref.dtype)

    # Single fused MXU pass: [t_lin | h_lin] = x @ [Wt | Wh] + [bt | bh], f32 accumulation.
    lin = jnp.dot(x_mxu, w_ref[...], preferred_element_type=jnp.float32)
    lin = lin + b_ref[...].astype(jnp.float32)                   # (tm, 2*Fp)

    t_lin = lin[:, :fp]                                          # 128-aligned lane slices
    h_lin = lin[:, fp:]

    # sigmoid's exp runs on the EUP; switch to pl.reciprocal(1+exp(-t), approx=True)
    # only if profiling shows the epilogue is VALU-bound.
    t = jax.nn.sigmoid(t_lin)
    h = jnp.where(h_lin >= 0, h_lin, ns * h_lin)                 # LeakyReLU

    xf = x.astype(jnp.float32)
    z = t * h + (1.0 - t) * xf                                   # (tm, Fp)
    # Padded feature columns already give z == 0 (x=0, W col=0, b=0 => t=0.5, h=0),
    # so no mask is needed before the row-sum.

    inv_f = 1.0 / float(f_real)
    mean = jnp.sum(z, axis=-1, keepdims=True) * inv_f
    centered = z - mean
    if needs_mask:
        # F was padded to a multiple of 128: restrict the variance statistic to real
        # columns (two-pass, numerically stable form).
        col = jax.lax.broadcasted_iota(jnp.int32, z.shape, 1)
        centered = jnp.where(col < f_real, centered, 0.0)
    var = jnp.sum(centered * centered, axis=-1, keepdims=True) * inv_f
    o_ref[...] = (centered * jax.lax.rsqrt(var + eps)).astype(o_ref.dtype)


def fuse_highway_params(wt, bt, wh, bh, dtype=None):
    """Build the fused (Fp, 2*Fp) weight and (1, 2*Fp) bias ONCE (hoisted out of forward).

    wt/wh are (in_features, out_features) (i.e. PyTorch weight transposed); bt/bh are
    (features,).  Features are zero-padded to a multiple of 128 so kernel loads/stores are
    lane-dense.  Pass dtype=jnp.bfloat16 for a bf16 MXU path (epilogue stays f32).
    """
    F = wt.shape[0]
    Fp = _round_up(F, 128)
    wdt = dtype if dtype is not None else wt.dtype
    w = jnp.zeros((Fp, 2 * Fp), dtype=wdt)
    w = w.at[:F, :F].set(wt.astype(wdt))
    w = w.at[:F, Fp:Fp + F].set(wh.astype(wdt))
    b = jnp.zeros((1, 2 * Fp), dtype=jnp.float32)
    b = b.at[0, :F].set(bt.astype(jnp.float32))
    b = b.at[0, Fp:Fp + F].set(bh.astype(jnp.float32))
    return w, b


def highway_forward(x, w_fused, b_fused, *, ns, eps=1e-5, tm=None, x_buffers=None):
    """x: (B, S, F).  w_fused/b_fused come from fuse_highway_params."""
    B, S, F = x.shape
    M = B * S
    Fp = w_fused.shape[0]
    needs_f_pad = (Fp != F)

    x2 = x.reshape(M, F)                          # free (no copy) when F is 128-aligned
    if needs_f_pad:
        x2 = jnp.pad(x2, ((0, 0), (0, Fp - F)))   # lane-dense feature dim

    # Row tile: scale with feature width (HBM-roofline-friendly sizes), then cap so the
    # row grid has >= ~4 steps (2 TensorCores on v7x x double-buffering).
    if tm is None:
        tm = 1024 if Fp <= 256 else (512 if Fp <= 512 else 256)
    tm_eff = max(8, min(tm, _round_up(pl.cdiv(M, 4), 8)))
    grid_m = pl.cdiv(M, tm_eff)                   # partial tail block is masked by Pallas

    kernel = functools.partial(
        _highway_kernel, ns=float(ns), eps=float(eps),
        f_real=int(F), fp=int(Fp), needs_mask=needs_f_pad)

    # VMEM budget: streamed x/out tiles, single-buffered fused W + bias, f32 temporaries.
    # TODO(synk): once the single-buffered W exceeds ~2/3 of VMEM (F >~ 2300 f32 /
    #             ~3300 bf16 on v7x), switch to a K-tiled variant (second "arbitrary" grid
    #             axis over the contraction dim with an f32 (tm, 2*Fp) scratch accumulator)
    #             instead of keeping [Wt|Wh] fully resident.
    nx_buf = 2 if x_buffers is None else int(x_buffers)
    vmem_est = (nx_buf * tm_eff * Fp * x2.dtype.itemsize          # x tiles
                + 2 * tm_eff * Fp * x.dtype.itemsize              # out tiles (double-buffered)
                + (Fp * 2 * Fp) * w_fused.dtype.itemsize          # fused W (single buffer)
                + 2 * Fp * b_fused.dtype.itemsize                 # fused bias (single buffer)
                + 6 * tm_eff * 2 * Fp * 4)                        # f32 intermediates headroom
    vmem_cap = int(_vmem_capacity_bytes() * 0.8)                  # generation-aware ceiling
    vmem_limit = int(min(max(vmem_est, 32 * 1024 * 1024), vmem_cap))

    out = pl.pallas_call(
        kernel,
        out_shape=jax.ShapeDtypeStruct((M, Fp), x.dtype),
        grid_spec=pltpu.PrefetchScalarGridSpec(
            num_scalar_prefetch=0,
            grid=(grid_m,),
            in_specs=[
                _block_spec((tm_eff, Fp), lambda i: (i, 0), x_buffers),  # streamed x rows
                _block_spec((Fp, 2 * Fp), lambda i: (0, 0), 1),          # resident [Wt|Wh]
                _block_spec((1, 2 * Fp), lambda i: (0, 0), 1),           # resident [bt|bh]
            ],
            out_specs=pl.BlockSpec((tm_eff, Fp), lambda i: (i, 0)),
        ),
        compiler_params=pltpu.CompilerParams(
            dimension_semantics=("parallel",),
            vmem_limit_bytes=vmem_limit),
    )(x2, w_fused, b_fused)

    if needs_f_pad:
        out = out[:, :F]
    return out.reshape(B, S, F)


def highway_reference(x, wt, bt, wh, bh, *, ns, eps=1e-5):
    """Pure-JAX reference mirroring the PyTorch forward."""
    t = jax.nn.sigmoid(x @ wt + bt)
    h_lin = x @ wh + bh
    h = jnp.where(h_lin >= 0, h_lin, ns * h_lin)
    z = t * h + (1.0 - t) * x
    mean = jnp.mean(z, axis=-1, keepdims=True)
    var = jnp.mean((z - mean) ** 2, axis=-1, keepdims=True)
    return (z - mean) / jnp.sqrt(var + eps)


if __name__ == "__main__":
    B, S, F = 2, 8, 32          # batch, "channels"/seq rows, features
    ns = 0.2                    # LeakyReLU negative slope

    key = jax.random.PRNGKey(0)
    kx, kwt, kbt, kwh, kbh = jax.random.split(key, 5)

    x = jax.random.normal(kx, (B, S, F), dtype=jnp.float32)
    # "Linear" params stored as (in_features, out_features) so the kernel does x @ W
    # (equivalent to PyTorch's x @ W.T with W of shape (out, in)).
    bound = 1.0 / (F ** 0.5)
    wt = jax.random.uniform(kwt, (F, F), jnp.float32, -bound, bound)
    bt = jax.random.uniform(kbt, (F,), jnp.float32, -bound, bound)
    wh = jax.random.uniform(kwh, (F, F), jnp.float32, -bound, bound)
    bh = jax.random.uniform(kbh, (F,), jnp.float32, -bound, bound)

    # Fuse the Linear params once (parameter-init-time cost, not paid per forward pass).
    w_fused, b_fused = fuse_highway_params(wt, bt, wh, bh)

    out = highway_forward(x, w_fused, b_fused, ns=ns)
    out = jax.block_until_ready(out)

    ref = highway_reference(x, wt, bt, wh, bh, ns=ns)
    assert out.shape == (B, S, F)
    assert jnp.allclose(out, ref, atol=1e-4, rtol=1e-4)

    print("KERNEL_OK")
</pallas_src>

<mosaic_0001>
module attributes {stable_mosaic.version = 11 : i64} {
  func.func @_highway_kernel(%arg0: i32, %arg1: memref<8x128xf32, #tpu.memory_space<vmem>>, %arg2: memref<128x256xf32, #tpu.memory_space<vmem>>, %arg3: memref<1x256xf32, #tpu.memory_space<vmem>>, %arg4: memref<8x128xf32, #tpu.memory_space<vmem>>) attributes {dimension_semantics = [#tpu.dimension_semantics<parallel>], iteration_bounds = array<i64: 2>, scalar_prefetch = 0 : i64, scratch_operands = 0 : i64, tpu.core_type = #tpu.core_type<tc>, window_params = [{transform_indices = @transform_0, window_bounds = array<i64: 8, 128>}, {pipeline_mode = #tpu.pipeline_mode<synchronous>, transform_indices = @transform_1, window_bounds = array<i64: 128, 256>}, {pipeline_mode = #tpu.pipeline_mode<synchronous>, transform_indices = @transform_2, window_bounds = array<i64: 1, 256>}, {transform_indices = @transform_3, window_bounds = array<i64: 8, 128>}]} {
    %c0 = arith.constant 0 : index
    %c0_0 = arith.constant 0 : index
    %0 = vector.load %arg1[%c0, %c0_0] : memref<8x128xf32, #tpu.memory_space<vmem>>, vector<8x128xf32>
    %c0_1 = arith.constant 0 : index
    %c0_2 = arith.constant 0 : index
    %1 = vector.load %arg2[%c0_1, %c0_2] : memref<128x256xf32, #tpu.memory_space<vmem>>, vector<128x256xf32>
    %cst = arith.constant dense<0.000000e+00> : vector<8x256xf32>
    %2 = tpu.matmul %0, %1, %cst {dimension_numbers = #tpu.dot_dimension_numbers<[1], [0], [0], [1], [0, 0, 1, 1], [], []>} : vector<8x128xf32>, vector<128x256xf32>, vector<8x256xf32> -> vector<8x256xf32>
    %c0_3 = arith.constant 0 : index
    %c0_4 = arith.constant 0 : index
    %3 = vector.load %arg3[%c0_3, %c0_4] : memref<1x256xf32, #tpu.memory_space<vmem>>, vector<1x256xf32>
    %4 = vector.broadcast %3 : vector<1x256xf32> to vector<8x256xf32>
    %5 = arith.addf %2, %4 : vector<8x256xf32>
    %6 = vector.extract_strided_slice %5 {offsets = [0, 0], sizes = [8, 128], strides = [1, 1]} : vector<8x256xf32> to vector<8x128xf32>
    %7 = vector.extract_strided_slice %5 {offsets = [0, 128], sizes = [8, 128], strides = [1, 1]} : vector<8x256xf32> to vector<8x128xf32>
    %8 = arith.negf %6 : vector<8x128xf32>
    %9 = math.exp %8 : vector<8x128xf32>
    %cst_5 = arith.constant 1.000000e+00 : f32
    %10 = vector.broadcast %cst_5 : f32 to vector<8x128xf32>
    %11 = arith.addf %10, %9 : vector<8x128xf32>
    %12 = arith.divf %10, %11 : vector<8x128xf32>
    %cst_6 = arith.constant 0.000000e+00 : f32
    %13 = vector.broadcast %cst_6 : f32 to vector<8x128xf32>
    %14 = arith.cmpf oge, %7, %13 : vector<8x128xf32>
    %cst_7 = arith.constant 2.000000e-01 : f32
    %15 = vector.broadcast %cst_7 : f32 to vector<8x128xf32>
    %16 = arith.mulf %15, %7 : vector<8x128xf32>
    %17 = arith.select %14, %7, %16 : vector<8x128xi1>, vector<8x128xf32>
    %18 = arith.mulf %12, %17 : vector<8x128xf32>
    %cst_8 = arith.constant 1.000000e+00 : f32
    %19 = vector.broadcast %cst_8 : f32 to vector<8x128xf32>
    %20 = arith.subf %19, %12 : vector<8x128xf32>
    %21 = arith.mulf %20, %0 : vector<8x128xf32>
    %22 = arith.addf %18, %21 : vector<8x128xf32>
    %cst_9 = arith.constant dense<0.000000e+00> : vector<8xf32>
    %23 = vector.multi_reduction <add>, %22, %cst_9 [1] : vector<8x128xf32> to vector<8xf32>
    %24 = vector.shape_cast %23 : vector<8xf32> to vector<8x1xf32>
    %cst_10 = arith.constant 3.125000e-02 : f32
    %25 = vector.broadcast %cst_10 : f32 to vector<8x1xf32>
    %26 = arith.mulf %24, %25 : vector<8x1xf32>
    %27 = vector.broadcast %26 : vector<8x1xf32> to vector<8x128xf32>
    %28 = arith.subf %22, %27 : vector<8x128xf32>
    %29 = tpu.iota {dimensions = array<i32: 1>} : vector<8x128xi32>
    %c32_i32 = arith.constant 32 : i32
    %30 = vector.broadcast %c32_i32 : i32 to vector<8x128xi32>
    %31 = arith.cmpi slt, %29, %30 : vector<8x128xi32>
    %cst_11 = arith.constant 0.000000e+00 : f32
    %32 = vector.broadcast %cst_11 : f32 to vector<8x128xf32>
    %33 = arith.select %31, %28, %32 : vector<8x128xi1>, vector<8x128xf32>
    %34 = arith.mulf %33, %33 : vector<8x128xf32>
    %cst_12 = arith.constant dense<0.000000e+00> : vector<8xf32>
    %35 = vector.multi_reduction <add>, %34, %cst_12 [1] : vector<8x128xf32> to vector<8xf32>
    %36 = vector.shape_cast %35 : vector<8xf32> to vector<8x1xf32>
    %cst_13 = arith.constant 3.125000e-02 : f32
    %37 = vector.broadcast %cst_13 : f32 to vector<8x1xf32>
    %38 = arith.mulf %36, %37 : vector<8x1xf32>
    %cst_14 = arith.constant 9.99999974E-6 : f32
    %39 = vector.broadcast %cst_14 : f32 to vector<8x1xf32>
    %40 = arith.addf %38, %39 : vector<8x1xf32>
    %41 = math.rsqrt %40 : vector<8x1xf32>
    %42 = vector.broadcast %41 : vector<8x1xf32> to vector<8x128xf32>
    %43 = arith.mulf %33, %42 : vector<8x128xf32>
    %c0_15 = arith.constant 0 : index
    %c0_16 = arith.constant 0 : index
    %44 = vector.load %arg4[%c0_15, %c0_16] : memref<8x128xf32, #tpu.memory_space<vmem>>, vector<8x128xf32>
    tpu.vector_store %arg4[%c0_15, %c0_16], %43 {strides = array<i32>} : memref<8x128xf32, #tpu.memory_space<vmem>>, vector<8x128xf32>,
    return
  }
  func.func @transform_0(%arg0: i32) -> (i32, i32) {
    %c0_i32 = arith.constant 0 : i32
    %c0_i32_0 = arith.constant 0 : i32
    return %arg0, %c0_i32 : i32, i32
  }
  func.func @transform_1(%arg0: i32) -> (i32, i32) {
    %c0_i32 = arith.constant 0 : i32
    %c0_i32_0 = arith.constant 0 : i32
    %c0_i32_1 = arith.constant 0 : i32
    return %c0_i32, %c0_i32_0 : i32, i32
  }
  func.func @transform_2(%arg0: i32) -> (i32, i32) {
    %c0_i32 = arith.constant 0 : i32
    %c0_i32_0 = arith.constant 0 : i32
    %c0_i32_1 = arith.constant 0 : i32
    return %c0_i32, %c0_i32_0 : i32, i32
  }
  func.func @transform_3(%arg0: i32) -> (i32, i32) {
    %c0_i32 = arith.constant 0 : i32
    %c0_i32_0 = arith.constant 0 : i32
    return %arg0, %c0_i32 : i32, i32
  }
}

</mosaic_0001>

<bundles_post_ra>
// kernel: tpu_custom_call.1
= control target key start
LH: loop header
LB: loop body
LE: loop exit
PB: predicated region body
PF: predicated region fallthrough
CT: control target
= control target key end

     0   :  { %8 = vsyncpa [#allocation3], 0  ;;  %s915_s0 = inlined_call_operand.hbm [shape: f32[16,128], index: 0, kind: input, shape index: {}]   ;;  %s916_s1 = inlined_call_operand.hbm [shape: f32[128,256], index: 1, kind: input, shape index: {}]   ;;  %s917_s2 = inlined_call_operand.vmem [shape: f32[1,256], index: 2, kind: input, shape index: {}]   ;;  %s918_s3 = inlined_call_operand.hbm [shape: f32[16,128], index: 3, kind: output, shape index: {}]  }
   0x1   :  { %10 = vsyncpa [#allocation3 + $0x1], 0 }
   0x2   :  { %11 = vsyncpa [#allocation6], 0 }
   0x3   :  { %12 = vsyncpa [#allocation4], 0 }
   0x4   :  { %14 = vsyncpa [#allocation4 + $0x1], 0  ;;  %s709_s12 = smov 0   ;;  %s711_s13 = smov 0  }
   0x5   :  { %s713_s14 = smov 0   ;;  %s715_s15 = smov 0  }
   0x6 LB: > { %s730_s16 = sadd.s32 4294967295, %s681_s15   ;;  %s440_s17 = sadd.s32 4294967294, %s681_s15   ;;  %s681_s15 = sphi %s715_s15, %s938_s15   ;;  %s677_s14 = sphi %s713_s14, %s937_s14   ;;  %s673_s13 = sphi %s711_s13, %s936_s13   ;;  %s669_s12 = sphi %s709_s12, %s935_s12  }
   0x7   : > { %p40_p0 = scmp.ne.s32.totalorder %s673_s13, %s669_s12  ;;  %p919_p1 = scmp.eq.s32.totalorder %s730_s16, 0 }
   0x8   : > { %p112_p3 = scmp.eq.s32.totalorder %s440_s17, 1  ;;  %p441_p5 = scmp.ge.s32.totalorder %s681_s15, 1 }
   0x9   : > { %p739_p4 = por %p919_p1, %p40_p0  ;;  %p119_p7 = scmp.lt.s32.totalorder %s681_s15, 3 }
   0xa   : > { %p744_p6 = por %p112_p3, %p40_p0  ;;  %s683_s21 = smov [#allocation5]  }
   0xb   : > { %s922_s18 = scalar_select %p739_p4, 1, 0 }
   0xc   : > { %s923_s19 = scalar_select %p744_p6, 1, 0 }
   0xd   : > { %p749_p8 = pnand %p441_p5, %p119_p7  ;;  %s131_s22 = sshll.u32 %s683_s21, 4  ;;  %s753_s22 = int_to_ptr.vmem [resolvable:$true] %s131_s22 }
   0xe   : > { %s765_s24 = sadd.s32 1, %s681_s15   ;;  %s27_s25 = sadd.s32 1, %s677_s14 }
   0xf   : > { %s924_s20 = scalar_select %p749_p8, 1, 0 }
  0x10   : > { %p495_p9 = pneg %p749_p8  ;;  %s24_s26 = ssub.s32 %s681_s15, %s765_s24 }
  0x11   : > { %s553_s29 = scalar_lea.hbm %s916_s1, 4096 }
  0x12   : > { %p760_p11 = pnand %p495_p9, %p919_p1  ;;  %p554_p12 = scmp.ne.s32.totalorder %s916_s1, %s553_s29 }
  0x13   : > { %p560_p5 = scmp.lt.u32.totalorder %s553_s29, %s916_s1 }
  0x14   : > { %p555_p13 = pneg %p760_p11 }
  0x16   : > { %p556_p0 = pnand %p555_p13, %p554_p12 }
  0x18   : > { %p557_p3 = pneg %p556_p0 }
  0x1a   : > { %p562_p7 = pnand %p560_p5, %p557_p3 }
  0x1c   : > { %565 = shalt.err (!%p562_p7)
}
  0x1d   : > { %s566_s7 = scalar_lea.vmem %s753_s22, 4096  ;;  %p574_p2 = scmp.lt.s32.totalorder %s753_s22, %s753_s22 }
  0x1e   : > { %p567_p9 = scmp.ne.s32.totalorder %s753_s22, %s566_s7  ;;  %p575_p6 = scmp.lt.s32.totalorder %s566_s7, %s566_s7 }
  0x20   : > { %p569_p10 = pnand %p567_p9, %p555_p13  ;;  %p576_p4 = por %p575_p6, %p574_p2 }
  0x22   : > { %p570_p1 = pneg %p569_p10 }
  0x24   : > { %p577_p8 = pnand %p576_p4, %p570_p1 }
  0x26   : > { %580 = shalt.err (!%p577_p8)
}
  0x27   : > { %s684_s8 = smov 256   ;;  %s685_s9 = smov 16  }
  0x28   : > { %498 = dma.hbm_to_vmem [thread:$0]  (!%p760_p11), %s916_s1, 4096, %s753_s22, [#allocation6], %s684_s8, %s684_s8, %s685_s9  }
  0x29   : > { %p25_p2 = scmp.eq.s32.totalorder %s24_s26, 0  ;;  %p34_p1 = scmp.ne.s32.totalorder %s677_s14, %s673_s13 }
  0x2a   : > { %p35_p4 = scmp.eq.s32.totalorder %s681_s15, 0  ;;  %p508_p6 = scmp.lt.s32.totalorder %s681_s15, 2 }
  0x2b   : > { %s796_s17 = scalar_select %p25_p2, %s677_s14, %s27_s25  }
  0x2c   : > { %p36_p8 = por %p35_p4, %p34_p1  ;;  %p926_p10 = scmp.eq.s32.totalorder %s730_s16, 1 }
  0x2d   : > { %s148_s27 = sand.u32 1, %s677_s14   ;;  %s445_s28 = sshll.u32 %s681_s15, 7 }
  0x2e   : > { %p800_p12 = por %p926_p10, %p34_p1  ;;  %s444_s29 = sshll.u32 %s148_s27, 3 }
  0x2f   : > { %s809_s4 = scalar_lea.hbm %s915_s0, %s445_s28  ;;  %s152_s22 = scalar_lea.vmem [#allocation2], %s444_s29 }
  0x30   : > { %s159_s25 = sshll.u32 %s152_s22, 4  ;;  %p811_p11 = pnand %p508_p6, %p36_p8  ;;  %s815_s25 = int_to_ptr.vmem [resolvable:$true] %s159_s25 }
  0x31   : > { %s149_s5 = scalar_lea.sflag [#allocation3], %s148_s27  ;;  %s581_s6 = scalar_lea.hbm %s809_s4, 128 }
  0x32   : > { %p582_p13 = scmp.ne.s32.totalorder %s809_s4, %s581_s6  ;;  %p583_p0 = pneg %p811_p11 }
  0x33   : > { %s586_s9 = scalar_lea.hbm %s915_s0, 256  ;;  %p587_p7 = scmp.lt.u32.totalorder %s809_s4, %s915_s0 }
  0x34   : > { %p584_p3 = pnand %p583_p0, %p582_p13  ;;  %p588_p9 = scmp.lt.u32.totalorder %s586_s9, %s581_s6 }
  0x35   : > { %p590_p1 = scmp.lt.u32.totalorder %s581_s6, %s809_s4 }
  0x36   : > { %p585_p5 = pneg %p584_p3  ;;  %p589_p2 = por %p588_p9, %p587_p7 }
  0x38   : > { %p591_p4 = por %p590_p1, %p589_p2 }
  0x3a   : > { %p592_p6 = pnand %p591_p4, %p585_p5 }
  0x3c   : > { %595 = shalt.err (!%p592_p6)
}
  0x3d   : > { %s596_s27 = scalar_lea.vmem %s815_s25, 128  ;;  %s686_s28 = smov [#allocation2]  }
  0x3e   : > { %p597_p8 = scmp.ne.s32.totalorder %s815_s25, %s596_s27  ;;  %s601_s29 = sshll.u32 %s686_s28, 4  ;;  %s602_s29 = int_to_ptr.vmem [resolvable:$false] %s601_s29 }
  0x3f   : > { %s603_s23 = scalar_lea.vmem %s602_s29, 256  ;;  %p604_p3 = scmp.lt.s32.totalorder %s815_s25, %s602_s29 }
  0x40   : > { %p599_p10 = pnand %p597_p8, %p583_p0  ;;  %p605_p7 = scmp.lt.s32.totalorder %s603_s23, %s596_s27 }
  0x42   : > { %p600_p13 = pneg %p599_p10  ;;  %p606_p9 = por %p605_p7, %p604_p3 }
  0x44   : > { %p607_p2 = pnand %p606_p9, %p600_p13 }
  0x46   : > { %610 = shalt.err (!%p607_p2)
}
  0x47   : > { %502 = dma.hbm_to_vmem [thread:$0]  (!%p811_p11), %s809_s4, 128, %s815_s25, %s149_s5  }
  0x48   : > { %p929_p5 = scmp.ne.s32.totalorder %s924_s20, 0 }
  0x49   : > { %s845_s30 = sand.u32 (!%p929_p5), 1, %s673_s13   ;;  %p930_p0 = scmp.ne.s32.totalorder (!%p929_p5), %s922_s18, 0 }
  0x4a   : > { %168 = sbr.rel (%p929_p5) target bundleno = 688 (0x2b0), region = 32  ;;  %s447_s22 = sshll.u32 (!%p929_p5), %s845_s30, 3 }
  0x4b   : > { %s171_s6 = scalar_lea.sflag (!%p929_p5), [#allocation3], %s845_s30  ;;  %s851_s7 = scalar_lea.vmem (!%p929_p5), [#allocation2], %s447_s22 }
  0x51   : > { %656 = dma.done.wait (%p930_p0), %s171_s6, 128  }
  0x52   : > { %658 = vsyncadd (%p930_p0), %s171_s6, 4294967168  ;;  %p931_p11 = scmp.eq.s32.totalorder %s730_s16, 0 }
  0x54   : > { %660 = dma.done.wait (%p931_p11), [#allocation6], 4096   ;;  %p932_p1 = pmov %p931_p11 }
  0x55   : > { %v687_v0 = vmov 0.0   ;;  %v203_v1 = vld [vmem:[#allocation5 + $0x8] sm:$0xff]  ;;  %v205_v2 = vld [vmem:[#allocation5 + $0x18] sm:$0xff]  ;;  %v202_v3 = vld [vmem:[#allocation5] sm:$0xff]  ;;  %v236_v50 = vlaneseq  ;;  %s452_s4 = sshll.u32 %s730_s16, 7  ;;  %s200_s25 = scalar_lea.vmem [#allocation7], %s447_s22 }
  0x56   : > { %662 = vsyncadd (%p932_p1), [#allocation6], 4294963200  ;;  %310 = vmatprep.mubr.f32.mxu0 %v687_v0  ;;  %v455_v4 = vpack.c.bf16 %v205_v2, %v203_v1  ;;  %v204_v5 = vld [vmem:[#allocation5 + $0x10] sm:$0xff]  ;;  %v207_v6 = vld [vmem:[#allocation5 + $0x28] sm:$0xff]  ;;  %s360_s26 = sshll.u32 %s200_s25, 4  ;;  %s871_s9 = scalar_lea.hbm %s918_s3, %s452_s4  ;;  %s873_s26 = int_to_ptr.vmem [resolvable:$true] %s360_s26 }
  0x57   : > { %v209_v7 = vld [vmem:[#allocation5 + $0x38] sm:$0xff]  ;;  %v457_v8 = vpack.c.bf16 %v204_v5, %v202_v3  ;;  %v206_v10 = vld [vmem:[#allocation5 + $0x20] sm:$0xff]  ;;  %v208_v11 = vld [vmem:[#allocation5 + $0x30] sm:$0xff]  ;;  %v237_v51 = vshrl.u32 %v236_v50, 7  ;;  %s347_s10 = scalar_lea.sflag [#allocation4], %s845_s30  ;;  %s611_s11 = scalar_lea.vmem %s873_s26, 128 }
  0x58   : > { %v459_v9 = vpack.c.bf16 %v209_v7, %v207_v6  ;;  %v211_v12 = vld [vmem:[#allocation5 + $0x48] sm:$0xff]  ;;  %456 = vmatprep.subr.bf16.mxu0 %v455_v4  ;;  %v213_v13 = vld [vmem:[#allocation5 + $0x58] sm:$0xff]  ;;  %v461_v14 = vpack.c.bf16 %v208_v11, %v206_v10  ;;  %v210_v16 = vld [vmem:[#allocation5 + $0x40] sm:$0xff]  ;;  %v335_v7 = vand.u32 127, %v236_v50  ;;  %p612_p4 = scmp.ne.s32.totalorder %s873_s26, %s611_s11  ;;  %s688_s16 = smov [#allocation7]  }
  0x59   : > { %458 = vmatpush1.bf16.msra.mxu0 %v457_v8  ;;  %v463_v15 = vpack.c.bf16 %v213_v13, %v211_v12  ;;  %v212_v17 = vld [vmem:[#allocation5 + $0x50] sm:$0xff]  ;;  %v215_v18 = vld [vmem:[#allocation5 + $0x68] sm:$0xff]  ;;  %v217_v19 = vld [vmem:[#allocation5 + $0x78] sm:$0xff]  ;;  %v238_v52 = vsub.s32 0, %v237_v51  ;;  %v242_v59 = vsub.s32 1, %v237_v51  ;;  %s615_s27 = sshll.u32 %s688_s16, 4  ;;  %s616_s27 = int_to_ptr.vmem [resolvable:$false] %s615_s27 }
  0x5a   : > { %460 = vmatprep.subr.bf16.mxu0 %v459_v9  ;;  %v465_v20 = vpack.c.bf16 %v212_v17, %v210_v16  ;;  %v467_v21 = vpack.c.bf16 %v217_v19, %v215_v18  ;;  %v214_v22 = vld [vmem:[#allocation5 + $0x60] sm:$0xff]  ;;  %v216_v23 = vld [vmem:[#allocation5 + $0x70] sm:$0xff]  ;;  %v219_v24 = vld [vmem:[#allocation5 + $0x88] sm:$0xff]  ;;  %vm336_vm1 = vcmp.lt.s32.totalorder %v335_v7, 32  ;;  %p613_p6 = pnand %p612_p4, %p800_p12  ;;  %s617_s28 = scalar_lea.vmem %s616_s27, 256 }
  0x5b   : > { %v221_v25 = vld [vmem:[#allocation5 + $0x98] sm:$0xff]  ;;  %v469_v26 = vpack.c.bf16 %v216_v23, %v214_v22  ;;  %v218_v28 = vld [vmem:[#allocation5 + $0x80] sm:$0xff]  ;;  %v220_v29 = vld [vmem:[#allocation5 + $0x90] sm:$0xff]  ;;  %p618_p10 = scmp.lt.s32.totalorder %s873_s26, %s616_s27  ;;  %p619_p13 = scmp.lt.s32.totalorder %s617_s28, %s611_s11 }
  0x5c   : > { %v471_v27 = vpack.c.bf16 %v221_v25, %v219_v24  ;;  %v223_v30 = vld [vmem:[#allocation5 + $0xa8] sm:$0xff]  ;;  %v225_v31 = vld [vmem:[#allocation5 + $0xb8] sm:$0xff]  ;;  %v473_v32 = vpack.c.bf16 %v220_v29, %v218_v28  ;;  %v222_v34 = vld [vmem:[#allocation5 + $0xa0] sm:$0xff]  ;;  %p614_p8 = pneg %p613_p6 }
  0x5d   : > { %462 = vmatpush1.bf16.msra.mxu0 %v461_v14  ;;  %v475_v33 = vpack.c.bf16 %v225_v31, %v223_v30  ;;  %v224_v35 = vld [vmem:[#allocation5 + $0xb0] sm:$0xff]  ;;  %v227_v36 = vld [vmem:[#allocation5 + $0xc8] sm:$0xff]  ;;  %v229_v37 = vld [vmem:[#allocation5 + $0xd8] sm:$0xff]  ;;  %p620_p3 = por %p619_p13, %p618_p10 }
  0x5e   : > { %464 = vmatprep.subr.bf16.mxu0 %v463_v15  ;;  %v477_v38 = vpack.c.bf16 %v224_v35, %v222_v34  ;;  %v479_v39 = vpack.c.bf16 %v229_v37, %v227_v36  ;;  %v226_v40 = vld [vmem:[#allocation5 + $0xc0] sm:$0xff]  ;;  %v228_v41 = vld [vmem:[#allocation5 + $0xd0] sm:$0xff]  ;;  %v231_v42 = vld [vmem:[#allocation5 + $0xe8] sm:$0xff] }
  0x5f   : > { %v233_v43 = vld [vmem:[#allocation5 + $0xf8] sm:$0xff]  ;;  %v481_v44 = vpack.c.bf16 %v228_v41, %v226_v40  ;;  %v230_v46 = vld [vmem:[#allocation5 + $0xe0] sm:$0xff]  ;;  %v232_v47 = vld [vmem:[#allocation5 + $0xf0] sm:$0xff]  ;;  %p621_p7 = pnand %p620_p3, %p614_p8 }
  0x60   : > { %v483_v45 = vpack.c.bf16 %v233_v43, %v231_v42  ;;  %v485_v48 = vpack.c.bf16 %v232_v47, %v230_v46  ;;  %v201_v49 = vld [vmem:[%s851_s7] sm:$0xff] }
  0x61   : > { %466 = vmatpush1.bf16.msra.mxu0 %v465_v20  ;;  %v234_v53 = vld [vmem:[%s917_s2] sm:$0x3] }
  0x62   : > { %468 = vmatprep.subr.bf16.mxu0 %v467_v21  ;;  %v239_v54 = vrot.slane %v234_v53, %v238_v52  ;;  %v243_v62 = vrot.slane %v234_v53, %v242_v59 }
  0x65   : > { %470 = vmatpush1.bf16.msra.mxu0 %v469_v26 }
  0x66   : > { %472 = vmatprep.subr.bf16.mxu0 %v471_v27 }
  0x69   : > { %474 = vmatpush1.bf16.msra.mxu0 %v473_v32 }
  0x6a   : > { %476 = vmatprep.subr.bf16.mxu0 %v475_v33 }
  0x6d   : > { %478 = vmatpush1.bf16.msra.mxu0 %v477_v38 }
  0x6e   : > { %480 = vmatprep.subr.bf16.mxu0 %v479_v39 }
  0x71   : > { %482 = vmatpush1.bf16.msra.mxu0 %v481_v44 }
  0x72   : > { %484 = vmatprep.subr.bf16.mxu0 %v483_v45 }
  0x75   : > { %486 = vmatpush1.bf16.msra.mxu0 %v485_v48 }
  0x78   : > { %311 = vmatmul.mubr.f32.vlgmr.msra.gmra.mrb[0].mxu0 %v201_v49 }
 0x14b   : > { %v312_v55 = vpop.f32.mrb[0].mxu0 }
 0x14c   : > { %v313_v56 = vadd.f32 %v312_v55, %v239_v54  ;;  %v314_v57 = vpop.f32.mrb[1].mxu0 }
 0x14d   : > { %v315_v63 = vadd.f32 %v314_v57, %v243_v62 }
 0x14e   : > { %v450_v58 = vmul.f32 -1.442695, %v313_v56 }
 0x14f   : > { %v324_v0 = vmul.f32 0.2, %v315_v63  ;;  %vm323_vm0 = vcmp.ge.f32.partialorder %v315_v63, 0.0 }
 0x150   : > { %547 = vpow2.f32 %v450_v58 }
 0x151   : > { %v325_v2 = vsel %vm323_vm0, %v315_v63, %v324_v0 }
 0x15a   : > { %v548_v60 = vpop.eup %547 }
 0x15b   : > { %v320_v61 = vadd.f32 1.0, %v548_v60 }
 0x15d   : > { %549 = vrcp.f32 %v320_v61 }
 0x167   : > { %v550_v1 = vpop.eup %549 }
 0x168   : > { %v326_v3 = vmul.f32 %v550_v1, %v325_v2  ;;  %v327_v4 = vsub.f32 1.0, %v550_v1 }
 0x16a   : > { %v328_v5 = vmul.f32 %v327_v4, %v201_v49 }
 0x16c   : > { %v329_v6 = vadd.f32 %v328_v5, %v326_v3 }
 0x16e   : > { %330 = vadd.xlane.f32.xlu0 %v329_v6 }
 0x1fb   : > { %v331_v8 = vpop.xlane.xlu0 %330 }
 0x1fc   : > { %v332_v9 = vmul.f32 0.03125, %v331_v8 }
 0x1fe   : > { %v333_v10 = vsub.f32 %v329_v6, %v332_v9 }
 0x200   : > { %v337_v11 = vsel %vm336_vm1, %v333_v10, 0.0 }
 0x201   : > { %v338_v12 = vmul.f32 %v337_v11, %v337_v11 }
 0x203   : > { %339 = vadd.xlane.f32.xlu0 %v338_v12 }
 0x290   : > { %v340_v13 = vpop.xlane.xlu0 %339 }
 0x291   : > { %v341_v14 = vmul.f32 0.03125, %v340_v13 }
 0x293   : > { %v342_v15 = vadd.f32 1e-05, %v341_v14 }
 0x295   : > { %551 = vrsqrt.f32 %v342_v15 }
 0x29f   : > { %v552_v16 = vpop.eup %551 }
 0x2a0   : > { %v344_v17 = vmul.f32 %v552_v16, %v337_v11 }
 0x2a2   : > { %345 = vst [vmem:[%s200_s25] sm:$0xff] %v344_v17 }
 0x2a3   : > { %624 = shalt.err (!%p621_p7)
}
 0x2a4   : > { %s625_s29 = scalar_lea.hbm %s871_s9, 128  ;;  %s629_s22 = scalar_lea.hbm %s918_s3, 256 }
 0x2a5   : > { %p626_p9 = scmp.ne.s32.totalorder %s871_s9, %s625_s29  ;;  %p630_p0 = scmp.lt.u32.totalorder %s871_s9, %s918_s3 }
 0x2a6   : > { %p631_p11 = scmp.lt.u32.totalorder %s629_s22, %s625_s29  ;;  %p633_p4 = scmp.lt.u32.totalorder %s625_s29, %s871_s9 }
 0x2a7   : > { %p627_p2 = pnand %p626_p9, %p800_p12 }
 0x2a8   : > { %p632_p1 = por %p631_p11, %p630_p0 }
 0x2a9   : > { %p628_p5 = pneg %p627_p2 }
 0x2aa   : > { %p634_p6 = por %p633_p4, %p632_p1 }
 0x2ac   : > { %p635_p8 = pnand %p634_p6, %p628_p5 }
 0x2ae   : > { %638 = shalt.err (!%p635_p8)
}
 0x2af   : > { %493 = dma.vmem_to_hbm [thread:$0]  (%p800_p12), %s873_s26, 128, %s871_s9, %s347_s10  }
 0x2b0 PF: > { %s372_s18 = sand.u32 1, %s669_s12   ;;  %p933_p10 = scmp.ne.s32.totalorder %s923_s19, 0 }
 0x2b1   : > { %p934_p13 = scmp.ge.s32.totalorder %s681_s15, 2  ;;  %s373_s20 = scalar_lea.sflag [#allocation4], %s372_s18 }
 0x2b3   : > { %p504_p3 = pnand %p934_p13, %p933_p10 }
 0x2b5   : > { %664 = dma.done.wait (!%p504_p3), %s373_s20, 128  }
 0x2b6   : > { %666 = vsyncadd (!%p504_p3), %s373_s20, 4294967168  ;;  %p17_p7 = scmp.ge.s32.totalorder %s765_s24, 4   ;;  %s935_s12 = smov %s673_s13 }
 0x2b7   : > { %s936_s13 = smov %s677_s14  ;;  %s937_s14 = smov %s796_s17 }
 0x2b8   : > { %s938_s15 = smov %s765_s24  ;;  %19 = sbr.rel (!%p17_p7) target bundleno = 6 (0x6), region = 81 }
 0x2bf   :  { %378 = vsyncpa [#allocation3], 1 }
 0x2c0   :  { %380 = vsyncpa [#allocation3 + $0x1], 1 }
 0x2c1   :  { %381 = vsyncpa [#allocation6], 1 }
 0x2c2   :  { %382 = vsyncpa [#allocation4], 1 }
 0x2c3   :  { %384 = vsyncpa [#allocation4 + $0x1], 1 }

</bundles_post_ra>
